<compile_context>
chip_gen: v6e
topology: v6e:2x2x1
jax: 0.10.0
libtpu: 0.0.40
codegen_flags: <defaults>
</compile_context>

<pallas_src>
import math

import jax
import jax.numpy as jnp
from jax.experimental import pallas as pl
from jax.experimental.pallas import tpu as pltpu

_SHIFT = math.log(2.0)                    # matches torch.log(torch.tensor(2.0)).item()
_LANE = 128
_DEFAULT_BLOCK_BYTES = 4 * 1024 * 1024    # good for v7x HBM rates; harmless on v5e/v6e
_MAX_BLOCK_BYTES = 6 * 1024 * 1024        # 4x (in+out, double-buffered) stays < 32 MiB
_MIN_BLOCK_BYTES = 64 * 1024
_VMEM_LIMIT_BYTES = 32 * 1024 * 1024      # fits v7x (64 MiB phys) and v5e/v6e (128 MiB)


def _shifted_softplus_kernel(x_ref, o_ref):
    x = x_ref[...]
    # bf16 inputs: evaluate exp/log1p in bf16 (v6e/v7x EUP has a bf16 path ->
    # ~2x transcendental throughput, keeps the kernel HBM-bound on v7x).
    # Everything else goes through f32 (numerically-stable softplus).
    cdt = jnp.bfloat16 if x.dtype == jnp.bfloat16 else jnp.float32
    xc = x.astype(cdt)
    sp = jnp.log1p(jnp.exp(-jnp.abs(xc))) + jnp.maximum(xc, 0)
    o_ref[...] = (sp - _SHIFT).astype(o_ref.dtype)


def _sublane_multiple(dtype):
    itemsize = jnp.dtype(dtype).itemsize
    if itemsize >= 4:
        return 8
    if itemsize == 2:
        return 16
    return 32


def _run_2d(x2d, block_bytes):
    """Launch the elementwise kernel over a lane-dense 2-D slab."""
    rows, width = x2d.shape
    dtype = x2d.dtype
    itemsize = jnp.dtype(dtype).itemsize
    sub = _sublane_multiple(dtype)

    block_bytes = int(min(max(block_bytes, _MIN_BLOCK_BYTES), _MAX_BLOCK_BYTES))
    block_elems = max(1, block_bytes // itemsize)
    br = max(sub, (block_elems // width) // sub * sub)

    if rows <= br:
        if rows >= 2 * sub:
            # On v7x the grid axis is sharded across 2 TensorCores only when
            # there are >=2 steps: split mid-sized arrays into two blocks.
            br = pl.cdiv(pl.cdiv(rows, 2), sub) * sub
        else:
            br = rows  # tiny: single block equal to the full array (allowed)
    grid = (pl.cdiv(rows, br),)

    in_spec = pl.BlockSpec((br, width), lambda i: (i, 0))
    block_actual_bytes = br * width * itemsize
    if block_actual_bytes < 1024 * 1024 and grid[0] > 2 and hasattr(pl, "Buffered"):
        # Small blocks expose DMA issue latency; deepen input pipelining.
        try:
            in_spec = pl.BlockSpec((br, width), lambda i: (i, 0),
                                   pipeline_mode=pl.Buffered(3))
        except TypeError:
            pass

    return pl.pallas_call(
        _shifted_softplus_kernel,
        out_shape=jax.ShapeDtypeStruct((rows, width), dtype),
        grid_spec=pltpu.PrefetchScalarGridSpec(
            num_scalar_prefetch=0,
            grid=grid,
            in_specs=[in_spec],
            out_specs=pl.BlockSpec((br, width), lambda i: (i, 0)),
        ),
        compiler_params=pltpu.CompilerParams(
            dimension_semantics=("parallel",),
            vmem_limit_bytes=_VMEM_LIMIT_BYTES),
    )(x2d)


def shifted_softplus(x, *, block_bytes=_DEFAULT_BLOCK_BYTES):
    """Apply ShiftedSoftplus elementwise to an array of any shape."""
    orig_shape = x.shape
    orig_dtype = x.dtype
    n = int(x.size)
    if n == 0:
        return x

    x_flat = jnp.ravel(x)
    n_main = (n // _LANE) * _LANE

    if n_main == 0:
        # Fewer than 128 elements: single full-array block, no padding needed.
        return _run_2d(x_flat.reshape(1, n), block_bytes).reshape(orig_shape)

    # Widest lane-dense slab width that divides the aligned prefix exactly ->
    # metadata-only reshape, no pad / extra HBM round trip.
    width = _LANE
    for w in (4096, 2048, 1024, 512, 256):
        if n_main % w == 0:
            width = w
            break

    prefix = x_flat if n_main == n else x_flat[:n_main]
    main_out = _run_2d(prefix.reshape(n_main // width, width), block_bytes).reshape(-1)

    if n_main == n:
        return main_out.reshape(orig_shape)

    # <128-element unaligned tail: plain XLA (negligible work), replacing the
    # old full-array pad + slice round trip on this path.
    tail = x_flat[n_main:].astype(jnp.float32)
    tail_out = (jax.nn.softplus(tail) - _SHIFT).astype(orig_dtype)
    return jnp.concatenate([main_out, tail_out]).reshape(orig_shape)


if __name__ == "__main__":
    key = jax.random.PRNGKey(0)
    k1, k2, k3, k4, k5 = jax.random.split(key, 5)

    def _ref(x):
        return jax.nn.softplus(x.astype(jnp.float32)) - _SHIFT

    # 1) Small NCHW-like input (aligned, single wide block).
    x1 = jax.random.normal(k1, (2, 4, 16, 16), dtype=jnp.float32) * 3.0
    o1 = jax.block_until_ready(shifted_softplus(x1))
    assert o1.shape == x1.shape and o1.dtype == x1.dtype
    assert jnp.allclose(o1, _ref(x1), atol=1e-5, rtol=1e-5)

    # 2) Tiny unaligned element count (<128 elements: full-array block, no pad).
    x2 = jax.random.normal(k2, (3, 5, 7), dtype=jnp.float32) * 3.0
    o2 = jax.block_until_ready(shifted_softplus(x2))
    assert o2.shape == x2.shape and o2.dtype == x2.dtype
    assert jnp.allclose(o2, _ref(x2), atol=1e-5, rtol=1e-5)

    # 3) Unaligned with >128 elements (aligned-prefix kernel + tiny XLA tail).
    x3 = jax.random.normal(k3, (7, 131), dtype=jnp.float32) * 3.0
    o3 = jax.block_until_ready(shifted_softplus(x3))
    assert o3.shape == x3.shape and o3.dtype == x3.dtype
    assert jnp.allclose(o3, _ref(x3), atol=1e-5, rtol=1e-5)

    # 4) Aligned input with a small block override -> multi-step grid
    #    (also exercises the Buffered(3) deep-pipelining path).
    x4 = jax.random.normal(k4, (64, 4096), dtype=jnp.float32) * 3.0
    o4 = jax.block_until_ready(shifted_softplus(x4, block_bytes=128 * 1024))
    assert o4.shape == x4.shape and o4.dtype == x4.dtype
    assert jnp.allclose(o4, _ref(x4), atol=1e-5, rtol=1e-5)

    # 5) bf16 input (exercises the bf16 transcendental path on v6e/v7x).
    x5 = (jax.random.normal(k5, (16, 1024), dtype=jnp.float32) * 3.0).astype(jnp.bfloat16)
    o5 = jax.block_until_ready(shifted_softplus(x5))
    assert o5.shape == x5.shape and o5.dtype == jnp.bfloat16
    assert jnp.allclose(o5.astype(jnp.float32), _ref(x5), atol=5e-2, rtol=5e-2)

    print("KERNEL_OK")
</pallas_src>

<mosaic_0001>
module attributes {stable_mosaic.version = 11 : i64} {
  func.func @_shifted_softplus_kernel(%arg0: i32, %arg1: memref<1x2048xf32, #tpu.memory_space<vmem>>, %arg2: memref<1x2048xf32, #tpu.memory_space<vmem>>) attributes {dimension_semantics = [#tpu.dimension_semantics<parallel>], iteration_bounds = array<i64: 1>, scalar_prefetch = 0 : i64, scratch_operands = 0 : i64, tpu.core_type = #tpu.core_type<tc>, window_params = [{transform_indices = @transform_0, window_bounds = array<i64: 1, 2048>}, {transform_indices = @transform_1, window_bounds = array<i64: 1, 2048>}]} {
    %c0 = arith.constant 0 : index
    %c0_0 = arith.constant 0 : index
    %0 = vector.load %arg1[%c0, %c0_0] : memref<1x2048xf32, #tpu.memory_space<vmem>>, vector<1x2048xf32>
    %1 = math.absf %0 : vector<1x2048xf32>
    %cst = arith.constant 0.000000e+00 : f32
    %2 = vector.broadcast %cst : f32 to vector<1x2048xf32>
    %3 = arith.subf %2, %1 : vector<1x2048xf32>
    %4 = math.exp %3 : vector<1x2048xf32>
    %5 = math.log1p %4 : vector<1x2048xf32>
    %cst_1 = arith.constant 0.000000e+00 : f32
    %6 = vector.broadcast %cst_1 : f32 to vector<1x2048xf32>
    %7 = arith.maximumf %0, %6 : vector<1x2048xf32>
    %8 = arith.addf %5, %7 : vector<1x2048xf32>
    %cst_2 = arith.constant 0.693147182 : f32
    %9 = vector.broadcast %cst_2 : f32 to vector<1x2048xf32>
    %10 = arith.subf %8, %9 : vector<1x2048xf32>
    %c0_3 = arith.constant 0 : index
    %c0_4 = arith.constant 0 : index
    %11 = vector.load %arg2[%c0_3, %c0_4] : memref<1x2048xf32, #tpu.memory_space<vmem>>, vector<1x2048xf32>
    tpu.vector_store %arg2[%c0_3, %c0_4], %10 {strides = array<i32>} : memref<1x2048xf32, #tpu.memory_space<vmem>>, vector<1x2048xf32>,
    return
  }
  func.func @transform_0(%arg0: i32) -> (i32, i32) {
    %c0_i32 = arith.constant 0 : i32
    %c0_i32_0 = arith.constant 0 : i32
    return %arg0, %c0_i32 : i32, i32
  }
  func.func @transform_1(%arg0: i32) -> (i32, i32) {
    %c0_i32 = arith.constant 0 : i32
    %c0_i32_0 = arith.constant 0 : i32
    return %arg0, %c0_i32 : i32, i32
  }
}

</mosaic_0001>

<bundles_post_ra>
// kernel: tpu_custom_call.1
= control target key start
LH: loop header
LB: loop body
LE: loop exit
PB: predicated region body
PF: predicated region fallthrough
CT: control target
= control target key end

     0   :  { %6 = vsyncpa [#allocation3], 0  ;;  %s146_s0 = inlined_call_operand.hbm [shape: f32[1,2048], index: 0, kind: input, shape index: {}]   ;;  %s147_s1 = inlined_call_operand.hbm [shape: f32[1,2048], index: 1, kind: output, shape index: {}]  }
   0x1   :  { %7 = vsyncpa [#allocation4], 0  ;;  %s128_s6 = smov [#allocation2]  }
   0x2   :  { %s14_s7 = sshll.u32 %s128_s6, 4  ;;  %s15_s7 = int_to_ptr.vmem [resolvable:$true] %s14_s7 }
   0x3   :  { %s92_s8 = scalar_lea.vmem %s15_s7, 256  ;;  %p97_p1 = scmp.lt.s32.totalorder %s15_s7, %s15_s7 }
   0x4   :  { %p93_p0 = scmp.ne.s32.totalorder %s15_s7, %s92_s8  ;;  %p98_p2 = scmp.lt.s32.totalorder %s92_s8, %s92_s8 }
   0x6   :  { %p99_p3 = por %p98_p2, %p97_p1 }
   0x8   :  { %p100_p4 = pnand %p99_p3, %p93_p0 }
   0xa   :  { %103 = shalt.err (!%p100_p4)
}
   0xb   :  { %17 = dma.hbm_to_vmem [thread:$0]  %s146_s0, 256, %s15_s7, [#allocation3]  }
   0xc   :  { %124 = dma.done.wait [#allocation3], 256  }
   0xd   :  { %125 = vsyncadd [#allocation3], 4294967040  ;;  %v21_v0 = vld [vmem:[#allocation2] sm:$0xff]  ;;  %v22_v1 = vld [vmem:[#allocation2 + $0x8] sm:$0xff]  ;;  %s129_s0 = smov [#allocation5]  }
   0xe   :  { %v23_v2 = vand.u32 2147483647, %v21_v0  ;;  %v24_v3 = vand.u32 2147483647, %v22_v1  ;;  %v49_v20 = vmax.f32 %v21_v0, 0.0  ;;  %v50_v24 = vmax.f32 %v22_v1, 0.0 }
   0xf   :  { %s63_s11 = sshll.u32 %s129_s0, 4  ;;  %s64_s11 = int_to_ptr.vmem [resolvable:$true] %s63_s11 }
  0x10   :  { %v25_v4 = vsub.f32 0.0, %v23_v2  ;;  %v26_v5 = vsub.f32 0.0, %v24_v3  ;;  %s104_s12 = scalar_lea.vmem %s64_s11, 256  ;;  %p109_p6 = scmp.lt.s32.totalorder %s64_s11, %s64_s11 }
  0x11   :  { %p105_p5 = scmp.ne.s32.totalorder %s64_s11, %s104_s12  ;;  %p110_p7 = scmp.lt.s32.totalorder %s104_s12, %s104_s12 }
  0x12   :  { %v27_v6 = vmul.f32 1.442695, %v25_v4  ;;  %v29_v7 = vmul.f32 1.442695, %v26_v5 }
  0x13   :  { %p111_p8 = por %p110_p7, %p109_p6 }
  0x14   :  { %76 = vpow2.f32 %v27_v6 }
  0x15   :  { %78 = vpow2.f32 %v29_v7  ;;  %p112_p9 = pnand %p111_p8, %p105_p5 }
  0x21   :  { %v77_v8 = vpop.eup %76 }
  0x22   :  { %v79_v9 = vpop.eup %78  ;;  %v31_v10 = vadd.f32 1.0, %v77_v8  ;;  %v34_v12 = vmul.f32 -0.5, %v77_v8  ;;  %v37_v15 = vand.u32 2147483647, %v77_v8 }
  0x23   :  { %v40_v11 = vadd.f32 1.0, %v79_v9  ;;  %v43_v13 = vmul.f32 -0.5, %v79_v9  ;;  %v46_v17 = vand.u32 2147483647, %v79_v9 }
  0x24   :  { %80 = vlog2.f32 %v31_v10  ;;  %v35_v14 = vadd.f32 1.0, %v34_v12  ;;  %vm38_vm0 = vcmp.lt.f32.partialorder %v37_v15, 0.0004427343 }
  0x25   :  { %82 = vlog2.f32 %v40_v11  ;;  %v44_v16 = vadd.f32 1.0, %v43_v13  ;;  %vm47_vm1 = vcmp.lt.f32.partialorder %v46_v17, 0.0004427343 }
  0x26   :  { %v36_v18 = vmul.f32 %v77_v8, %v35_v14 }
  0x27   :  { %v45_v21 = vmul.f32 %v79_v9, %v44_v16 }
  0x31   :  { %v81_v19 = vpop.eup %80 }
  0x32   :  { %v83_v22 = vpop.eup %82  ;;  %v33_v23 = vmul.f32 0.6931472, %v81_v19 }
  0x33   :  { %v42_v25 = vmul.f32 0.6931472, %v83_v22 }
  0x34   :  { %v39_v26 = vsel %vm38_vm0, %v36_v18, %v33_v23 }
  0x35   :  { %v51_v27 = vadd.f32 %v49_v20, %v39_v26  ;;  %v48_v28 = vsel %vm47_vm1, %v45_v21, %v42_v25 }
  0x36   :  { %v52_v29 = vadd.f32 %v50_v24, %v48_v28 }
  0x37   :  { %v72_v30 = vadd.f32 -0.6931472, %v51_v27 }
  0x38   :  { %v73_v31 = vadd.f32 -0.6931472, %v52_v29 }
  0x39   :  { %55 = vst [vmem:[#allocation5] sm:$0xff] %v72_v30 }
  0x3a   :  { %56 = vst [vmem:[#allocation5 + $0x8] sm:$0xff] %v73_v31 }
  0x3b   :  { %115 = shalt.err (!%p112_p9)
}
  0x3c   :  { %66 = dma.vmem_to_hbm [thread:$0]  %s64_s11, 256, %s147_s1, [#allocation4]  }
  0x3d   :  { %126 = dma.done.wait [#allocation4], 256  }
  0x3e   :  { %127 = vsyncadd [#allocation4], 4294967040 }
  0x3f   :  { %70 = vsyncpa [#allocation3], 1 }
  0x40   :  { %71 = vsyncpa [#allocation4], 1 }

</bundles_post_ra>
